<compile_context>
chip_gen: v7x
topology: tpu7x:2x2x1
jax: 0.10.0
libtpu: 0.0.40
codegen_flags: <defaults>
</compile_context>

<pallas_src>
import functools

import jax
import jax.numpy as jnp
from jax.experimental import pallas as pl
from jax.experimental.pallas import tpu as pltpu

OBS_PAD = 8       # padded obs lanes (full-array block; tiny K for the base matmul)
HEAD_PAD = 128    # fused head output lanes: [mu | var | value | zeros]
BATCH_TILE = 256  # batch rows per grid step once the batch is large


def a2c_kernel(x_ref, w1_ref, b1_ref, wh_ref, bh_ref, out_ref, *, act_size):
    # base = ReLU(x @ W1 + b1)   -- bf16 MXU inputs, f32 accumulate, f32 elementwise
    x = x_ref[...].astype(jnp.bfloat16)
    h = jnp.dot(x, w1_ref[...], preferred_element_type=jnp.float32) + b1_ref[...]
    h = jnp.maximum(h, 0.0)

    # fused head: z = h @ [Wmu | Wvar | Wv | 0] + [bmu | bvar | bv | 0]
    z = jnp.dot(h.astype(jnp.bfloat16), wh_ref[...],
                preferred_element_type=jnp.float32) + bh_ref[...]

    # per-column activation: tanh (mu cols), softplus (var cols), identity (value / pad)
    col = jax.lax.broadcasted_iota(jnp.int32, z.shape, 1)
    mu = jnp.tanh(z)
    sp = jnp.maximum(z, 0.0) + jnp.log1p(jnp.exp(-jnp.abs(z)))   # stable softplus
    out_ref[...] = jnp.where(col < act_size, mu,
                             jnp.where(col < 2 * act_size, sp, z))


def prepare_params(params, obs_size, act_size, hid_size):
    """One-time padding/fusion/bf16 cast of weights (hoisted out of the forward)."""
    w1p = (jnp.zeros((OBS_PAD, hid_size), jnp.float32)
           .at[:obs_size, :].set(params["w1"])).astype(jnp.bfloat16)
    b1p = params["b1"].reshape(1, hid_size).astype(jnp.float32)

    wh = jnp.zeros((hid_size, HEAD_PAD), jnp.float32)
    wh = wh.at[:, 0:act_size].set(params["wmu"])
    wh = wh.at[:, act_size:2 * act_size].set(params["wvar"])
    wh = wh.at[:, 2 * act_size:2 * act_size + 1].set(params["wv"])

    bh = jnp.zeros((1, HEAD_PAD), jnp.float32)
    bh = bh.at[:, 0:act_size].set(params["bmu"])
    bh = bh.at[:, act_size:2 * act_size].set(params["bvar"])
    bh = bh.at[:, 2 * act_size:2 * act_size + 1].set(params["bv"])

    return dict(w1=w1p, b1=b1p, wh=wh.astype(jnp.bfloat16), bh=bh)


def a2c_forward(x, prepared, act_size):
    """x: (B, obs_size) float32. Returns (mu, var, value) like the torch module."""
    B, obs = x.shape
    hid = prepared["w1"].shape[1]

    # round batch up to a multiple of 8; tile it once it exceeds BATCH_TILE
    B_pad = max(8, ((B + 7) // 8) * 8)
    if B_pad > BATCH_TILE:
        B_pad = ((B_pad + BATCH_TILE - 1) // BATCH_TILE) * BATCH_TILE
        tb = BATCH_TILE
    else:
        tb = B_pad
    nb = B_pad // tb

    # only per-call wrapper op: pad the observations
    xp = jnp.zeros((B_pad, OBS_PAD), jnp.float32).at[:B, :obs].set(x)

    out = pl.pallas_call(
        functools.partial(a2c_kernel, act_size=act_size),
        grid=(nb,),
        in_specs=[pl.BlockSpec((tb, OBS_PAD), lambda i: (i, 0)),
                  pl.BlockSpec((OBS_PAD, hid), lambda i: (0, 0)),
                  pl.BlockSpec((1, hid), lambda i: (0, 0)),
                  pl.BlockSpec((hid, HEAD_PAD), lambda i: (0, 0)),
                  pl.BlockSpec((1, HEAD_PAD), lambda i: (0, 0))],
        out_specs=pl.BlockSpec((tb, HEAD_PAD), lambda i: (i, 0)),
        out_shape=jax.ShapeDtypeStruct((B_pad, HEAD_PAD), jnp.float32),
        compiler_params=pltpu.CompilerParams(
            dimension_semantics=("parallel",)),
    )(xp, prepared["w1"], prepared["b1"], prepared["wh"], prepared["bh"])

    mu = out[:B, 0:act_size]
    var = out[:B, act_size:2 * act_size]
    val = out[:B, 2 * act_size:2 * act_size + 1]
    return mu, var, val


def init_params(key, obs_size, act_size, hid_size):
    """Deterministic nn.Linear-style init: U(-1/sqrt(fan_in), 1/sqrt(fan_in))."""
    ks = jax.random.split(key, 8)

    def linear(kw, kb, fan_in, fan_out):
        bound = 1.0 / float(fan_in) ** 0.5
        w = jax.random.uniform(kw, (fan_in, fan_out), jnp.float32, -bound, bound)
        b = jax.random.uniform(kb, (fan_out,), jnp.float32, -bound, bound)
        return w, b

    w1, b1 = linear(ks[0], ks[1], obs_size, hid_size)
    wmu, bmu = linear(ks[2], ks[3], hid_size, act_size)
    wvar, bvar = linear(ks[4], ks[5], hid_size, act_size)
    wv, bv = linear(ks[6], ks[7], hid_size, 1)
    return dict(w1=w1, b1=b1, wmu=wmu, bmu=bmu, wvar=wvar, bvar=bvar, wv=wv, bv=bv)


def a2c_ref_f32(x, p):
    h = jax.nn.relu(x @ p["w1"] + p["b1"])
    mu = jnp.tanh(h @ p["wmu"] + p["bmu"])
    var = jax.nn.softplus(h @ p["wvar"] + p["bvar"])
    val = h @ p["wv"] + p["bv"]
    return mu, var, val


def a2c_ref_bf16(x, p):
    """Reference matching the kernel's bf16-input / f32-accumulate matmuls."""
    bf = jnp.bfloat16
    h = jnp.maximum(jnp.dot(x.astype(bf), p["w1"].astype(bf),
                            preferred_element_type=jnp.float32) + p["b1"], 0.0)
    hb = h.astype(bf)
    mu = jnp.tanh(jnp.dot(hb, p["wmu"].astype(bf),
                          preferred_element_type=jnp.float32) + p["bmu"])
    var = jax.nn.softplus(jnp.dot(hb, p["wvar"].astype(bf),
                                  preferred_element_type=jnp.float32) + p["bvar"])
    val = jnp.dot(hb, p["wv"].astype(bf),
                  preferred_element_type=jnp.float32) + p["bv"]
    return mu, var, val


if __name__ == "__main__":
    obs_size, act_size, hid_size = 2, 1, 128   # MountainCarContinuous-v0 sizes
    batch = 4

    key = jax.random.PRNGKey(0)
    kx, kp, kx2 = jax.random.split(key, 3)
    x = jax.random.normal(kx, (batch, obs_size), jnp.float32)
    params = init_params(kp, obs_size, act_size, hid_size)
    prepared = prepare_params(params, obs_size, act_size, hid_size)   # hoisted: once

    mu, var, val = a2c_forward(x, prepared, act_size)
    jax.block_until_ready((mu, var, val))

    assert mu.shape == (batch, act_size)
    assert var.shape == (batch, act_size)
    assert val.shape == (batch, 1)

    # tight check vs bf16-matched reference, loose check vs pure-f32 reference
    mu_b, var_b, val_b = a2c_ref_bf16(x, params)
    assert jnp.allclose(mu, mu_b, atol=1e-4), "mu mismatch (bf16 ref)"
    assert jnp.allclose(var, var_b, atol=1e-4), "var mismatch (bf16 ref)"
    assert jnp.allclose(val, val_b, atol=1e-4), "value mismatch (bf16 ref)"

    mu_f, var_f, val_f = a2c_ref_f32(x, params)
    assert jnp.allclose(mu, mu_f, atol=3e-2), "mu mismatch (f32 ref)"
    assert jnp.allclose(var, var_f, atol=3e-2), "var mismatch (f32 ref)"
    assert jnp.allclose(val, val_f, atol=3e-2), "value mismatch (f32 ref)"

    # exercise the tiled (multi-program, parallel) batch path
    x2 = jax.random.normal(kx2, (300, obs_size), jnp.float32)
    mu2, var2, val2 = a2c_forward(x2, prepared, act_size)
    jax.block_until_ready((mu2, var2, val2))
    mu2_b, var2_b, val2_b = a2c_ref_bf16(x2, params)
    assert mu2.shape == (300, act_size) and val2.shape == (300, 1)
    assert jnp.allclose(mu2, mu2_b, atol=1e-4), "mu mismatch (batched)"
    assert jnp.allclose(var2, var2_b, atol=1e-4), "var mismatch (batched)"
    assert jnp.allclose(val2, val2_b, atol=1e-4), "value mismatch (batched)"

    print("KERNEL_OK")
</pallas_src>

<mosaic_0001>
module attributes {stable_mosaic.version = 11 : i64} {
  func.func @a2c_kernel(%arg0: i32, %arg1: memref<8x8xf32, #tpu.memory_space<vmem>>, %arg2: memref<8x128xbf16, #tpu.memory_space<vmem>>, %arg3: memref<1x128xf32, #tpu.memory_space<vmem>>, %arg4: memref<128x128xbf16, #tpu.memory_space<vmem>>, %arg5: memref<1x128xf32, #tpu.memory_space<vmem>>, %arg6: memref<8x128xf32, #tpu.memory_space<vmem>>) attributes {dimension_semantics = [#tpu.dimension_semantics<parallel>], iteration_bounds = array<i64: 1>, scalar_prefetch = 0 : i64, scratch_operands = 0 : i64, tpu.core_type = #tpu.core_type<tc>, window_params = [{transform_indices = @transform_0, window_bounds = array<i64: 8, 8>}, {pipeline_mode = #tpu.pipeline_mode<synchronous>, transform_indices = @transform_1, window_bounds = array<i64: 8, 128>}, {pipeline_mode = #tpu.pipeline_mode<synchronous>, transform_indices = @transform_2, window_bounds = array<i64: 1, 128>}, {pipeline_mode = #tpu.pipeline_mode<synchronous>, transform_indices = @transform_3, window_bounds = array<i64: 128, 128>}, {pipeline_mode = #tpu.pipeline_mode<synchronous>, transform_indices = @transform_4, window_bounds = array<i64: 1, 128>}, {transform_indices = @transform_5, window_bounds = array<i64: 8, 128>}]} {
    %c0 = arith.constant 0 : index
    %c0_0 = arith.constant 0 : index
    %0 = vector.load %arg1[%c0, %c0_0] : memref<8x8xf32, #tpu.memory_space<vmem>>, vector<8x8xf32>
    %1 = arith.truncf %0 : vector<8x8xf32> to vector<8x8xbf16>
    %c0_1 = arith.constant 0 : index
    %c0_2 = arith.constant 0 : index
    %2 = vector.load %arg2[%c0_1, %c0_2] : memref<8x128xbf16, #tpu.memory_space<vmem>>, vector<8x128xbf16>
    %cst = arith.constant dense<0.000000e+00> : vector<8x128xf32>
    %3 = tpu.matmul %1, %2, %cst {dimension_numbers = #tpu.dot_dimension_numbers<[1], [0], [0], [1], [0, 0, 1, 1], [], []>} : vector<8x8xbf16>, vector<8x128xbf16>, vector<8x128xf32> -> vector<8x128xf32>
    %c0_3 = arith.constant 0 : index
    %c0_4 = arith.constant 0 : index
    %4 = vector.load %arg3[%c0_3, %c0_4] : memref<1x128xf32, #tpu.memory_space<vmem>>, vector<1x128xf32>
    %5 = vector.broadcast %4 : vector<1x128xf32> to vector<8x128xf32>
    %6 = arith.addf %3, %5 : vector<8x128xf32>
    %cst_5 = arith.constant 0.000000e+00 : f32
    %7 = vector.broadcast %cst_5 : f32 to vector<8x128xf32>
    %8 = arith.maximumf %6, %7 : vector<8x128xf32>
    %9 = arith.truncf %8 : vector<8x128xf32> to vector<8x128xbf16>
    %c0_6 = arith.constant 0 : index
    %c0_7 = arith.constant 0 : index
    %10 = vector.load %arg4[%c0_6, %c0_7] : memref<128x128xbf16, #tpu.memory_space<vmem>>, vector<128x128xbf16>
    %cst_8 = arith.constant dense<0.000000e+00> : vector<8x128xf32>
    %11 = tpu.matmul %9, %10, %cst_8 {dimension_numbers = #tpu.dot_dimension_numbers<[1], [0], [0], [1], [0, 0, 1, 1], [], []>} : vector<8x128xbf16>, vector<128x128xbf16>, vector<8x128xf32> -> vector<8x128xf32>
    %c0_9 = arith.constant 0 : index
    %c0_10 = arith.constant 0 : index
    %12 = vector.load %arg5[%c0_9, %c0_10] : memref<1x128xf32, #tpu.memory_space<vmem>>, vector<1x128xf32>
    %13 = vector.broadcast %12 : vector<1x128xf32> to vector<8x128xf32>
    %14 = arith.addf %11, %13 : vector<8x128xf32>
    %15 = tpu.iota {dimensions = array<i32: 1>} : vector<8x128xi32>
    %16 = math.tanh %14 : vector<8x128xf32>
    %cst_11 = arith.constant 0.000000e+00 : f32
    %17 = vector.broadcast %cst_11 : f32 to vector<8x128xf32>
    %18 = arith.maximumf %14, %17 : vector<8x128xf32>
    %19 = math.absf %14 : vector<8x128xf32>
    %cst_12 = arith.constant 0.000000e+00 : f32
    %20 = vector.broadcast %cst_12 : f32 to vector<8x128xf32>
    %21 = arith.subf %20, %19 : vector<8x128xf32>
    %22 = math.exp %21 : vector<8x128xf32>
    %23 = math.log1p %22 : vector<8x128xf32>
    %24 = arith.addf %18, %23 : vector<8x128xf32>
    %c1_i32 = arith.constant 1 : i32
    %25 = vector.broadcast %c1_i32 : i32 to vector<8x128xi32>
    %26 = arith.cmpi slt, %15, %25 : vector<8x128xi32>
    %c2_i32 = arith.constant 2 : i32
    %27 = vector.broadcast %c2_i32 : i32 to vector<8x128xi32>
    %28 = arith.cmpi slt, %15, %27 : vector<8x128xi32>
    %29 = arith.select %28, %24, %14 : vector<8x128xi1>, vector<8x128xf32>
    %30 = arith.select %26, %16, %29 : vector<8x128xi1>, vector<8x128xf32>
    %c0_13 = arith.constant 0 : index
    %c0_14 = arith.constant 0 : index
    %31 = vector.load %arg6[%c0_13, %c0_14] : memref<8x128xf32, #tpu.memory_space<vmem>>, vector<8x128xf32>
    tpu.vector_store %arg6[%c0_13, %c0_14], %30 {strides = array<i32>} : memref<8x128xf32, #tpu.memory_space<vmem>>, vector<8x128xf32>,
    return
  }
  func.func @transform_0(%arg0: i32) -> (i32, i32) {
    %c0_i32 = arith.constant 0 : i32
    %c0_i32_0 = arith.constant 0 : i32
    return %arg0, %c0_i32 : i32, i32
  }
  func.func @transform_1(%arg0: i32) -> (i32, i32) {
    %c0_i32 = arith.constant 0 : i32
    %c0_i32_0 = arith.constant 0 : i32
    %c0_i32_1 = arith.constant 0 : i32
    return %c0_i32, %c0_i32_0 : i32, i32
  }
  func.func @transform_2(%arg0: i32) -> (i32, i32) {
    %c0_i32 = arith.constant 0 : i32
    %c0_i32_0 = arith.constant 0 : i32
    %c0_i32_1 = arith.constant 0 : i32
    return %c0_i32, %c0_i32_0 : i32, i32
  }
  func.func @transform_3(%arg0: i32) -> (i32, i32) {
    %c0_i32 = arith.constant 0 : i32
    %c0_i32_0 = arith.constant 0 : i32
    %c0_i32_1 = arith.constant 0 : i32
    return %c0_i32, %c0_i32_0 : i32, i32
  }
  func.func @transform_4(%arg0: i32) -> (i32, i32) {
    %c0_i32 = arith.constant 0 : i32
    %c0_i32_0 = arith.constant 0 : i32
    %c0_i32_1 = arith.constant 0 : i32
    return %c0_i32, %c0_i32_0 : i32, i32
  }
  func.func @transform_5(%arg0: i32) -> (i32, i32) {
    %c0_i32 = arith.constant 0 : i32
    %c0_i32_0 = arith.constant 0 : i32
    return %arg0, %c0_i32 : i32, i32
  }
}

</mosaic_0001>

<bundles_post_ra>
// kernel: tpu_custom_call.1
= control target key start
LH: loop header
LB: loop body
LE: loop exit
PB: predicated region body
PF: predicated region fallthrough
CT: control target
= control target key end

     0   :  { %10 = vsyncpa [#allocation3], 0  ;;  %s525_s0 = inlined_call_operand.hbm [shape: f32[8,8], index: 0, kind: input, shape index: {}]   ;;  %s526_s1 = inlined_call_operand.hbm [shape: bf16[8,128], index: 1, kind: input, shape index: {}]   ;;  %s527_s2 = inlined_call_operand.vmem [shape: f32[1,128], index: 2, kind: input, shape index: {}]   ;;  %s528_s3 = inlined_call_operand.hbm [shape: bf16[128,128], index: 3, kind: input, shape index: {}]   ;;  %s529_s4 = inlined_call_operand.vmem [shape: f32[1,128], index: 4, kind: input, shape index: {}]   ;;  %s530_s5 = inlined_call_operand.hbm [shape: f32[8,128], index: 5, kind: output, shape index: {}]  }
   0x1   :  { %11 = vsyncpa [#allocation6], 0 }
   0x2   :  { %12 = vsyncpa [#allocation4], 0  ;;  %s433_s18 = smov [#allocation5]   ;;  %s434_s20 = smov [#allocation2]  }
   0x3   :  { %s29_s19 = sshll.u32 %s433_s18, 4  ;;  %s19_s21 = sshll.u32 %s434_s20, 4  ;;  %s30_s19 = int_to_ptr.vmem [resolvable:$true] %s29_s19  ;;  %s20_s21 = int_to_ptr.vmem [resolvable:$true] %s19_s21 }
   0x4   :  { %s339_s24 = scalar_lea.hbm %s526_s1, 64 }
   0x5   :  { %p340_p0 = scmp.ne.s32.totalorder %s526_s1, %s339_s24  ;;  %p343_p1 = scmp.lt.u32.totalorder %s339_s24, %s526_s1 }
   0x7   :  { %p345_p2 = pnand %p343_p1, %p340_p0 }
   0x9   :  { %348 = shalt.err (!%p345_p2)
}
   0xa   :  { %s349_s29 = scalar_lea.vmem %s30_s19, 64  ;;  %p354_p4 = scmp.lt.s32.totalorder %s30_s19, %s30_s19 }
   0xb   :  { %p350_p3 = scmp.ne.s32.totalorder %s30_s19, %s349_s29  ;;  %p355_p5 = scmp.lt.s32.totalorder %s349_s29, %s349_s29 }
   0xd   :  { %p356_p6 = por %p355_p5, %p354_p4 }
   0xf   :  { %p357_p7 = pnand %p356_p6, %p350_p3 }
  0x11   :  { %360 = shalt.err (!%p357_p7)
}
  0x12   :  { %32 = dma.hbm_to_vmem [thread:$0]  %s526_s1, 64, %s30_s19, [#allocation6]  }
  0x13   :  { %s361_s9 = scalar_lea.hbm %s525_s0, 128 }
  0x14   :  { %p362_p8 = scmp.ne.s32.totalorder %s525_s0, %s361_s9  ;;  %p365_p9 = scmp.lt.u32.totalorder %s361_s9, %s525_s0 }
  0x16   :  { %p367_p10 = pnand %p365_p9, %p362_p8 }
  0x18   :  { %370 = shalt.err (!%p367_p10)
}
  0x19   :  { %s371_s14 = scalar_lea.vmem %s20_s21, 128  ;;  %p376_p12 = scmp.lt.s32.totalorder %s20_s21, %s20_s21 }
  0x1a   :  { %p372_p11 = scmp.ne.s32.totalorder %s20_s21, %s371_s14  ;;  %p377_p13 = scmp.lt.s32.totalorder %s371_s14, %s371_s14 }
  0x1c   :  { %p378_p0 = por %p377_p13, %p376_p12 }
  0x1e   :  { %p379_p1 = pnand %p378_p0, %p372_p11 }
  0x20   :  { %382 = shalt.err (!%p379_p1)
}
  0x21   :  { %22 = dma.hbm_to_vmem [thread:$0]  %s525_s0, 128, %s20_s21, [#allocation3]  }
  0x22   :  { %s435_s16 = smov [#allocation7]   ;;  %s383_s20 = scalar_lea.hbm %s528_s3, 1024 }
  0x23   :  { %s40_s17 = sshll.u32 %s435_s16, 4  ;;  %p384_p2 = scmp.ne.s32.totalorder %s528_s3, %s383_s20  ;;  %s41_s17 = int_to_ptr.vmem [resolvable:$true] %s40_s17 }
  0x24   :  { %p387_p3 = scmp.lt.u32.totalorder %s383_s20, %s528_s3 }
  0x26   :  { %p389_p4 = pnand %p387_p3, %p384_p2 }
  0x28   :  { %392 = shalt.err (!%p389_p4)
}
  0x29   :  { %s393_s26 = scalar_lea.vmem %s41_s17, 1024  ;;  %p398_p6 = scmp.lt.s32.totalorder %s41_s17, %s41_s17 }
  0x2a   :  { %p394_p5 = scmp.ne.s32.totalorder %s41_s17, %s393_s26  ;;  %p399_p7 = scmp.lt.s32.totalorder %s393_s26, %s393_s26 }
  0x2c   :  { %p400_p8 = por %p399_p7, %p398_p6 }
  0x2e   :  { %p401_p9 = pnand %p400_p8, %p394_p5 }
  0x30   :  { %404 = shalt.err (!%p401_p9)
}
  0x31   :  { %s436_s0 = smov 64   ;;  %s437_s21 = smov 4  }
  0x32   :  { %46 = dma.hbm_to_vmem [thread:$0]  %s528_s3, 1024, %s41_s17, [#allocation6], %s436_s0, %s436_s0, %s437_s21  }
  0x33   :  { %427 = dma.done.wait [#allocation3], 128  }
  0x34   :  { %428 = vsyncadd [#allocation3], 4294967168 }
  0x35   :  { %429 = dma.done.wait [#allocation6], 1088  }
  0x36   :  { %430 = vsyncadd [#allocation6], 4294966208  ;;  %v438_v0 = vmov 0.0   ;;  %vm439_vm0 = vmmov 0   ;;  %vm73_vm1 = vcmask 1043456   ;;  %v59_v2 = vld [vmem:[#allocation2] sm:$0xff]  ;;  %v230_v33 = vlaneseq }
  0x37   :  { %291 = vmatprep.subr.bf16.mxu0 %v438_v0  ;;  %293 = vmatprep.mubr.msk.bf16.mxu0 %vm439_vm0, %v438_v0  ;;  %v61_v1 = vld [vmem:[#allocation5] sm:$0xf]  ;;  %v60_v4 = vpack.c.bf16 %v59_v2, %v59_v2  ;;  %v325_v5 = vld [vmem:[#allocation7] sm:$0xff]   ;;  %vm69_vm2 = vcmask 64512   ;;  %v326_v6 = vld [vmem:[#allocation7 + $0x8] sm:$0xff]  }
  0x38   :  { %297 = vmatprep.subr.bf16.mxu1 %v438_v0  ;;  %313 = vmatprep.mubr.msk.bf16.mxu1 %vm439_vm0, %v438_v0  ;;  %v75_v3 = vsel %vm73_vm1, %v61_v1, 0  ;;  %v327_v7 = vld [vmem:[#allocation7 + $0x10] sm:$0xff]   ;;  %v328_v8 = vld [vmem:[#allocation7 + $0x18] sm:$0xff]   ;;  %v329_v9 = vld [vmem:[#allocation7 + $0x20] sm:$0xff]   ;;  %v231_v36 = vand.u32 127, %v230_v33 }
  0x39   :  { %292 = vmatpush3.bf16.msra.mxu0 %v75_v3  ;;  %298 = vmatpush3.bf16.msra.mxu1 %v325_v5  ;;  %v330_v10 = vld [vmem:[#allocation7 + $0x28] sm:$0xff]   ;;  %v331_v11 = vld [vmem:[#allocation7 + $0x30] sm:$0xff]   ;;  %v332_v12 = vld [vmem:[#allocation7 + $0x38] sm:$0xff]  }
  0x3a   :  { %299 = vmatprep.subr.bf16.mxu1 %v438_v0  ;;  %v269_v13 = vld [vmem:[%s527_s2] ss:$0 sm:$0xff]  ;;  %vm249_vm4 = vcmp.lt.s32.totalorder %v231_v36, 2  ;;  %s440_s2 = smov [#allocation8]   ;;  %vm248_vm5 = vcmp.lt.s32.totalorder %v231_v36, 1 }
  0x3b   :  { %v271_v21 = vld [vmem:[%s529_s4] ss:$0 sm:$0xff]  ;;  %s259_s4 = sshll.u32 %s440_s2, 4  ;;  %s260_s4 = int_to_ptr.vmem [resolvable:$true] %s259_s4 }
  0x3c   :  { %294 = vmatmul.mubr.msk.bf16.vlgmr.msra.gmra.mrb[0].mxu0 %vm69_vm2, %v60_v4  ;;  %s405_s7 = scalar_lea.vmem %s260_s4, 128  ;;  %p410_p11 = scmp.lt.s32.totalorder %s260_s4, %s260_s4 }
  0x3d   :  { %300 = vmatpush3.bf16.msra.mxu1 %v326_v6  ;;  %p406_p10 = scmp.ne.s32.totalorder %s260_s4, %s405_s7  ;;  %p411_p12 = scmp.lt.s32.totalorder %s405_s7, %s405_s7 }
  0x3e   :  { %301 = vmatprep.subr.bf16.mxu1 %v438_v0 }
  0x3f   :  { %p412_p13 = por %p411_p12, %p410_p11 }
  0x41   :  { %302 = vmatpush3.bf16.msra.mxu1 %v327_v7  ;;  %p413_p0 = pnand %p412_p13, %p406_p10 }
  0x42   :  { %303 = vmatprep.subr.bf16.mxu1 %v438_v0 }
  0x45   :  { %304 = vmatpush3.bf16.msra.mxu1 %v328_v8 }
  0x46   :  { %305 = vmatprep.subr.bf16.mxu1 %v438_v0 }
  0x49   :  { %306 = vmatpush3.bf16.msra.mxu1 %v329_v9 }
  0x4a   :  { %307 = vmatprep.subr.bf16.mxu1 %v438_v0 }
  0x4d   :  { %308 = vmatpush3.bf16.msra.mxu1 %v330_v10 }
  0x4e   :  { %309 = vmatprep.subr.bf16.mxu1 %v438_v0 }
  0x51   :  { %310 = vmatpush3.bf16.msra.mxu1 %v331_v11 }
  0x52   :  { %311 = vmatprep.subr.bf16.mxu1 %v438_v0 }
  0x55   :  { %312 = vmatpush3.bf16.msra.mxu1 %v332_v12 }
 0x10f   :  { %v111_v14 = vpop.f32.mrb[0].mxu0 }
 0x110   :  { %v112_v15 = vadd.f32 %v269_v13, %v111_v14  ;;  %v295_v16 = vpop.f32.mrb[1].mxu0 }
 0x111   :  { %v114_v17 = vpop.f32.mrb[2].mxu0 }
 0x112   :  { %v117_v18 = vmax.f32 %v112_v15, 0.0  ;;  %v296_v19 = vpop.f32.mrb[3].mxu0 }
 0x114   :  { %v118_v20 = vpack.c.bf16 %v117_v18, %v117_v18 }
 0x116   :  { %314 = vmatmul.mubr.bf16.vlgmr.msra.gmra.mrb[0].mxu1 %v118_v20 }
 0x1e9   :  { %v224_v22 = vpop.f32.mrb[0].mxu1 }
 0x1ea   :  { %v225_v23 = vadd.f32 %v271_v21, %v224_v22  ;;  %v315_v24 = vpop.f32.mrb[1].mxu1 }
 0x1eb   :  { %v227_v25 = vpop.f32.mrb[2].mxu1 }
 0x1ec   :  { %v234_v26 = vand.u32 2147483647, %v225_v23  ;;  %v316_v27 = vpop.f32.mrb[3].mxu1  ;;  %v233_v40 = vmax.f32 %v225_v23, 0.0 }
 0x1ee   :  { %v235_v28 = vsub.f32 0.0, %v234_v26 }
 0x1f0   :  { %v236_v29 = vmul.f32 1.442695, %v235_v28 }
 0x1f2   :  { %333 = vpow2.f32 %v236_v29 }
 0x1fc   :  { %v334_v30 = vpop.eup %333 }
 0x1fd   :  { %v238_v31 = vadd.f32 1.0, %v334_v30  ;;  %v241_v32 = vmul.f32 -0.5, %v334_v30  ;;  %v244_v35 = vand.u32 2147483647, %v334_v30 }
 0x1ff   :  { %335 = vlog2.f32 %v238_v31  ;;  %v242_v34 = vadd.f32 1.0, %v241_v32  ;;  %vm245_vm3 = vcmp.lt.f32.partialorder %v244_v35, 0.0004427343 }
 0x200   :  { %337 = vtanh.f32 %v225_v23 }
 0x201   :  { %v243_v39 = vmul.f32 %v334_v30, %v242_v34 }
 0x209   :  { %v336_v37 = vpop.eup %335 }
 0x20a   :  { %v240_v38 = vmul.f32 0.6931472, %v336_v37  ;;  %v338_v43 = vpop.eup %337 }
 0x20c   :  { %v246_v41 = vsel %vm245_vm3, %v243_v39, %v240_v38 }
 0x20d   :  { %v247_v42 = vadd.f32 %v246_v41, %v233_v40 }
 0x20f   :  { %v250_v44 = vsel %vm249_vm4, %v247_v42, %v225_v23 }
 0x210   :  { %v251_v45 = vsel %vm248_vm5, %v338_v43, %v250_v44 }
 0x211   :  { %252 = vst [vmem:[#allocation8] sm:$0xff] %v251_v45 }
 0x212   :  { %416 = shalt.err (!%p413_p0)
}
 0x213   :  { %s417_s10 = scalar_lea.hbm %s530_s5, 128 }
 0x214   :  { %p418_p1 = scmp.ne.s32.totalorder %s530_s5, %s417_s10  ;;  %p421_p2 = scmp.lt.u32.totalorder %s417_s10, %s530_s5 }
 0x216   :  { %p423_p3 = pnand %p421_p2, %p418_p1 }
 0x218   :  { %426 = shalt.err (!%p423_p3)
}
 0x219   :  { %262 = dma.vmem_to_hbm [thread:$0]  %s260_s4, 128, %s530_s5, [#allocation4]  }
 0x21a   :  { %431 = dma.done.wait [#allocation4], 128  }
 0x21b   :  { %432 = vsyncadd [#allocation4], 4294967168 }
 0x21c   :  { %266 = vsyncpa [#allocation3], 1 }
 0x21d   :  { %267 = vsyncpa [#allocation6], 1 }
 0x21e   :  { %268 = vsyncpa [#allocation4], 1 }

</bundles_post_ra>
